<compile_context>
chip_gen: v7x
topology: tpu7x:2x2x1
jax: 0.10.0
libtpu: 0.0.40
codegen_flags: <defaults>
</compile_context>

<pallas_src>
import functools

import jax
import jax.numpy as jnp
from jax import lax
from jax.experimental import pallas as pl
from jax.experimental.pallas import tpu as pltpu


def _round_up(x: int, m: int) -> int:
    return ((x + m - 1) // m) * m


def _cnn_kernel(x_ref, w_ref, b_ref, o_ref, *, L_out, C_out_p):
    # x_ref: (TB, Cin*L)            f32 or bf16 (NCL flattened, no time padding)
    # w_ref: (Cin*L, L_out*Cout_p)  bf16 Toeplitz-expanded conv weight
    # b_ref: (1, Cout_p)            f32
    # o_ref: (TB, Cout_p)           lane-dense output
    x = x_ref[...].astype(jnp.bfloat16)
    w = w_ref[...]

    # One MXU matmul with f32 accumulation.  Column block t*Cout_p:(t+1)*Cout_p
    # of the result is the conv output for time-window t (bias not yet added).
    acc = jnp.dot(x, w, preferred_element_type=jnp.float32)  # (TB, L_out*Cout_p)

    # Max over time via lane-aligned, static, 128-multiple slices (no relayout).
    m = acc[:, 0:C_out_p]
    for t in range(1, L_out):
        m = jnp.maximum(m, acc[:, t * C_out_p:(t + 1) * C_out_p])

    # Bias + ReLU after the max (both monotone -> identical result), on the
    # small (TB, Cout_p) tensor only.
    o_ref[...] = jnp.maximum(m + b_ref[...], 0.0).astype(o_ref.dtype)


def cnn_forward(x_ncl, weight, bias, *, kernel_size=5, padding=1, tb=2048,
                out_dtype=jnp.float32):
    """x_ncl: (B, Cin, L), weight: (Cout, Cin, K), bias: (Cout,) -> (B, Cout)."""
    B, C_in, L = x_ncl.shape
    C_out, _, K = weight.shape
    assert K == kernel_size
    L_out = L + 2 * padding - K + 1
    assert L_out >= 1

    C_out_p = _round_up(C_out, 128)       # lane-dense output channels
    CL = C_in * L                         # contraction dim (NCL flattened)
    N_cols = L_out * C_out_p              # matmul output width

    # ---- generation-dependent VMEM budget & batch tile --------------------
    try:
        vmem_phys = int(pltpu.get_tpu_info().vmem_capacity_bytes)
    except Exception:
        vmem_phys = 64 * 1024 * 1024      # conservative (v7x-sized) fallback
    vmem_limit = min(int(vmem_phys * 0.75), 112 * 1024 * 1024)
    vmem_budget = int(vmem_phys * 0.55)   # what we plan the tile against

    # TODO(synk): for large Cin*L the Toeplitz weight (Cin*L x L_out*Cout_p)
    # stops fitting VMEM; fall back to im2col built with pltpu.roll shifts.
    w_bytes = 2 * CL * N_cols * 2 + 2 * C_out_p * 4           # weight + bias (2-buf)
    per_row = (2 * CL * 4                                      # x block (2-buf, f32 worst case)
               + 2 * C_out_p * 4                               # out block (2-buf)
               + N_cols * 4                                    # f32 matmul result
               + C_out_p * 4)                                  # running max
    tb_vmem = max(8, (vmem_budget - w_bytes) // per_row)

    B_pad0 = _round_up(B, 8)
    TB = max(8, (min(tb, tb_vmem) // 8) * 8)
    TB = min(TB, B_pad0)
    if B_pad0 >= 16:                      # keep >= 2 grid steps (v7x has 2 TCs)
        TB = min(TB, max(8, (B_pad0 // 2) // 8 * 8))
    B_pad = _round_up(B_pad0, TB)

    # ---- Toeplitz-expanded weight (built once, tiny for char-CNN shapes) ---
    w_bf = weight.astype(jnp.bfloat16)                               # (Cout, Cin, K)
    w_bf = jnp.pad(w_bf, ((0, C_out_p - C_out), (0, 0), (0, 0)))     # (Cout_p, Cin, K)
    w_toep = jnp.zeros((C_in, L, L_out, C_out_p), jnp.bfloat16)
    for t in range(L_out):
        lo = max(0, t - padding)
        hi = min(L, t - padding + K)
        if hi <= lo:
            continue
        k_lo = lo - t + padding
        k_hi = hi - t + padding
        # W_toep[c, l, t, o] = w[o, c, l - t + padding]
        blk = jnp.transpose(w_bf[:, :, k_lo:k_hi], (1, 2, 0))        # (Cin, hi-lo, Cout_p)
        w_toep = w_toep.at[:, lo:hi, t, :].set(blk)
    w_2d = w_toep.reshape(CL, N_cols)

    b_2d = jnp.pad(bias.astype(jnp.float32),
                   (0, C_out_p - C_out)).reshape(1, C_out_p)

    # ---- activations: free reshape; pad+cast only if batch padding needed --
    x_2d = x_ncl.reshape(B, CL)
    if B_pad != B:
        # One fused XLA copy under jit (f32 read -> bf16 padded write);
        # otherwise x goes to the kernel untouched and is cast in-kernel.
        x_2d = jnp.pad(x_2d.astype(jnp.bfloat16), ((0, B_pad - B), (0, 0)))

    kernel = functools.partial(_cnn_kernel, L_out=L_out, C_out_p=C_out_p)

    flops = 2 * B_pad * CL * N_cols
    bytes_accessed = (B_pad * CL * x_2d.dtype.itemsize
                      + CL * N_cols * 2 + C_out_p * 4
                      + B_pad * C_out_p * jnp.dtype(out_dtype).itemsize)

    out = pl.pallas_call(
        kernel,
        out_shape=jax.ShapeDtypeStruct((B_pad, C_out_p), out_dtype),
        grid_spec=pltpu.PrefetchScalarGridSpec(
            num_scalar_prefetch=0,
            grid=(B_pad // TB,),
            in_specs=[
                pl.BlockSpec((TB, CL), lambda i: (i, 0)),            # batch-tiled x
                pl.BlockSpec((CL, N_cols), lambda i: (0, 0)),        # full Toeplitz weight
                pl.BlockSpec((1, C_out_p), lambda i: (0, 0)),        # full bias
            ],
            out_specs=pl.BlockSpec((TB, C_out_p), lambda i: (i, 0)),
        ),
        compiler_params=pltpu.CompilerParams(
            dimension_semantics=("parallel",),        # megacore sharding on v7x
            vmem_limit_bytes=int(vmem_limit),
        ),
        cost_estimate=pl.CostEstimate(
            flops=int(flops), transcendentals=0,
            bytes_accessed=int(bytes_accessed)),
    )(x_2d, w_2d, b_2d)

    # TODO(synk): downstream consumers could take the padded (B_pad, Cout_p)
    # buffer (or a bf16 output) directly to avoid this extra slice pass.
    return out[:B, :C_out]


def _reference(x_ncl, weight, bias, *, kernel_size=5, padding=1):
    """Pure-JAX reference identical to the PyTorch forward (bf16-cast inputs to
    match the kernel's bf16-in / f32-accumulate numerics)."""
    xr = x_ncl.astype(jnp.bfloat16).astype(jnp.float32)
    wr = weight.astype(jnp.bfloat16).astype(jnp.float32)
    y = lax.conv_general_dilated(
        xr, wr,
        window_strides=(1,),
        padding=[(padding, padding)],
        dimension_numbers=("NCH", "OIH", "NCH"),
    ) + bias[None, :, None]
    y = jnp.maximum(y, 0.0)
    return jnp.max(y, axis=-1)


if __name__ == "__main__":
    # Small shapes consistent with the module: batch=2, char_embed=4,
    # max_word_length=16, word_embed=8, kernel_size=5, padding=1.
    B, C_IN, L = 2, 4, 16
    C_OUT, K, PAD = 8, 5, 1

    key = jax.random.PRNGKey(0)
    kx, kw, kb = jax.random.split(key, 3)
    x = jax.random.normal(kx, (B, C_IN, L), dtype=jnp.float32)
    weight = 0.1 * jax.random.normal(kw, (C_OUT, C_IN, K), dtype=jnp.float32)
    bias = 0.1 * jax.random.normal(kb, (C_OUT,), dtype=jnp.float32)

    fwd = jax.jit(functools.partial(cnn_forward, kernel_size=K, padding=PAD))
    out = jax.block_until_ready(fwd(x, weight, bias))

    ref = _reference(x, weight, bias, kernel_size=K, padding=PAD)
    assert out.shape == (B, C_OUT)
    assert jnp.allclose(out, ref, atol=1e-3, rtol=1e-3), "mismatch vs reference"

    print("KERNEL_OK")
</pallas_src>

<mosaic_0001>
module attributes {stable_mosaic.version = 11 : i64} {
  func.func @_cnn_kernel(%arg0: i32, %arg1: memref<8x64xbf16, #tpu.memory_space<vmem>>, %arg2: memref<64x1792xbf16, #tpu.memory_space<vmem>>, %arg3: memref<1x128xf32, #tpu.memory_space<vmem>>, %arg4: memref<8x128xf32, #tpu.memory_space<vmem>>) attributes {dimension_semantics = [#tpu.dimension_semantics<parallel>], iteration_bounds = array<i64: 1>, scalar_prefetch = 0 : i64, scratch_operands = 0 : i64, tpu.core_type = #tpu.core_type<tc>, window_params = [{transform_indices = @transform_0, window_bounds = array<i64: 8, 64>}, {pipeline_mode = #tpu.pipeline_mode<synchronous>, transform_indices = @transform_1, window_bounds = array<i64: 64, 1792>}, {pipeline_mode = #tpu.pipeline_mode<synchronous>, transform_indices = @transform_2, window_bounds = array<i64: 1, 128>}, {transform_indices = @transform_3, window_bounds = array<i64: 8, 128>}]} {
    %c0 = arith.constant 0 : index
    %c0_0 = arith.constant 0 : index
    %0 = vector.load %arg1[%c0, %c0_0] : memref<8x64xbf16, #tpu.memory_space<vmem>>, vector<8x64xbf16>
    %c0_1 = arith.constant 0 : index
    %c0_2 = arith.constant 0 : index
    %1 = vector.load %arg2[%c0_1, %c0_2] : memref<64x1792xbf16, #tpu.memory_space<vmem>>, vector<64x1792xbf16>
    %cst = arith.constant dense<0.000000e+00> : vector<8x1792xf32>
    %2 = tpu.matmul %0, %1, %cst {dimension_numbers = #tpu.dot_dimension_numbers<[1], [0], [0], [1], [0, 0, 1, 1], [], []>} : vector<8x64xbf16>, vector<64x1792xbf16>, vector<8x1792xf32> -> vector<8x1792xf32>
    %3 = vector.extract_strided_slice %2 {offsets = [0, 0], sizes = [8, 128], strides = [1, 1]} : vector<8x1792xf32> to vector<8x128xf32>
    %4 = vector.extract_strided_slice %2 {offsets = [0, 128], sizes = [8, 128], strides = [1, 1]} : vector<8x1792xf32> to vector<8x128xf32>
    %5 = arith.maximumf %3, %4 : vector<8x128xf32>
    %6 = vector.extract_strided_slice %2 {offsets = [0, 256], sizes = [8, 128], strides = [1, 1]} : vector<8x1792xf32> to vector<8x128xf32>
    %7 = arith.maximumf %5, %6 : vector<8x128xf32>
    %8 = vector.extract_strided_slice %2 {offsets = [0, 384], sizes = [8, 128], strides = [1, 1]} : vector<8x1792xf32> to vector<8x128xf32>
    %9 = arith.maximumf %7, %8 : vector<8x128xf32>
    %10 = vector.extract_strided_slice %2 {offsets = [0, 512], sizes = [8, 128], strides = [1, 1]} : vector<8x1792xf32> to vector<8x128xf32>
    %11 = arith.maximumf %9, %10 : vector<8x128xf32>
    %12 = vector.extract_strided_slice %2 {offsets = [0, 640], sizes = [8, 128], strides = [1, 1]} : vector<8x1792xf32> to vector<8x128xf32>
    %13 = arith.maximumf %11, %12 : vector<8x128xf32>
    %14 = vector.extract_strided_slice %2 {offsets = [0, 768], sizes = [8, 128], strides = [1, 1]} : vector<8x1792xf32> to vector<8x128xf32>
    %15 = arith.maximumf %13, %14 : vector<8x128xf32>
    %16 = vector.extract_strided_slice %2 {offsets = [0, 896], sizes = [8, 128], strides = [1, 1]} : vector<8x1792xf32> to vector<8x128xf32>
    %17 = arith.maximumf %15, %16 : vector<8x128xf32>
    %18 = vector.extract_strided_slice %2 {offsets = [0, 1024], sizes = [8, 128], strides = [1, 1]} : vector<8x1792xf32> to vector<8x128xf32>
    %19 = arith.maximumf %17, %18 : vector<8x128xf32>
    %20 = vector.extract_strided_slice %2 {offsets = [0, 1152], sizes = [8, 128], strides = [1, 1]} : vector<8x1792xf32> to vector<8x128xf32>
    %21 = arith.maximumf %19, %20 : vector<8x128xf32>
    %22 = vector.extract_strided_slice %2 {offsets = [0, 1280], sizes = [8, 128], strides = [1, 1]} : vector<8x1792xf32> to vector<8x128xf32>
    %23 = arith.maximumf %21, %22 : vector<8x128xf32>
    %24 = vector.extract_strided_slice %2 {offsets = [0, 1408], sizes = [8, 128], strides = [1, 1]} : vector<8x1792xf32> to vector<8x128xf32>
    %25 = arith.maximumf %23, %24 : vector<8x128xf32>
    %26 = vector.extract_strided_slice %2 {offsets = [0, 1536], sizes = [8, 128], strides = [1, 1]} : vector<8x1792xf32> to vector<8x128xf32>
    %27 = arith.maximumf %25, %26 : vector<8x128xf32>
    %28 = vector.extract_strided_slice %2 {offsets = [0, 1664], sizes = [8, 128], strides = [1, 1]} : vector<8x1792xf32> to vector<8x128xf32>
    %29 = arith.maximumf %27, %28 : vector<8x128xf32>
    %c0_3 = arith.constant 0 : index
    %c0_4 = arith.constant 0 : index
    %30 = vector.load %arg3[%c0_3, %c0_4] : memref<1x128xf32, #tpu.memory_space<vmem>>, vector<1x128xf32>
    %31 = vector.broadcast %30 : vector<1x128xf32> to vector<8x128xf32>
    %32 = arith.addf %29, %31 : vector<8x128xf32>
    %cst_5 = arith.constant 0.000000e+00 : f32
    %33 = vector.broadcast %cst_5 : f32 to vector<8x128xf32>
    %34 = arith.maximumf %32, %33 : vector<8x128xf32>
    %c0_6 = arith.constant 0 : index
    %c0_7 = arith.constant 0 : index
    %35 = vector.load %arg4[%c0_6, %c0_7] : memref<8x128xf32, #tpu.memory_space<vmem>>, vector<8x128xf32>
    tpu.vector_store %arg4[%c0_6, %c0_7], %34 {strides = array<i32>} : memref<8x128xf32, #tpu.memory_space<vmem>>, vector<8x128xf32>,
    return
  }
  func.func @transform_0(%arg0: i32) -> (i32, i32) {
    %c0_i32 = arith.constant 0 : i32
    %c0_i32_0 = arith.constant 0 : i32
    return %arg0, %c0_i32 : i32, i32
  }
  func.func @transform_1(%arg0: i32) -> (i32, i32) {
    %c0_i32 = arith.constant 0 : i32
    %c0_i32_0 = arith.constant 0 : i32
    %c0_i32_1 = arith.constant 0 : i32
    return %c0_i32, %c0_i32_0 : i32, i32
  }
  func.func @transform_2(%arg0: i32) -> (i32, i32) {
    %c0_i32 = arith.constant 0 : i32
    %c0_i32_0 = arith.constant 0 : i32
    %c0_i32_1 = arith.constant 0 : i32
    return %c0_i32, %c0_i32_0 : i32, i32
  }
  func.func @transform_3(%arg0: i32) -> (i32, i32) {
    %c0_i32 = arith.constant 0 : i32
    %c0_i32_0 = arith.constant 0 : i32
    return %arg0, %c0_i32 : i32, i32
  }
}

</mosaic_0001>

<bundles_post_ra>
// kernel: cnn_forward.1
= control target key start
LH: loop header
LB: loop body
LE: loop exit
PB: predicated region body
PF: predicated region fallthrough
CT: control target
= control target key end

     0   :  { %v819_v1 = vmov 0   ;;  %vm352_vm0 = vcmask 523264   ;;  %s1040_s1 = inlined_call_operand.vmem [shape: bf16[64,1792], index: 1, kind: input, shape index: {}]   ;;  %s1041_s0 = inlined_call_operand.vmem [shape: bf16[8,64], index: 0, kind: input, shape index: {}]   ;;  %s1042_s2 = inlined_call_operand.vmem [shape: f32[1,128], index: 2, kind: input, shape index: {}]   ;;  %s1043_s3 = inlined_call_operand.vmem [shape: f32[8,128], index: 3, kind: output, shape index: {}]  }
   0x1   :  { %v735_v0 = vld [vmem:[%s1040_s1 + $0x4] ss:$56 sps:$4 sm:$0xff]   ;;  %388 = vmatprep.mubr.bf16.mxu0 %v819_v1  ;;  %429 = vmatprep.mubr.bf16.mxu1 %v819_v1  ;;  %v737_v2 = vld [vmem:[%s1040_s1] ss:$56 sps:$4 sm:$0xff]   ;;  %v740_v4 = vld [vmem:[%s1040_s1 + $0x74] ss:$56 sps:$4 sm:$0xff]  }
   0x2   :  { %356 = vmatprep.subr.bf16.mxu0 %v735_v0  ;;  %v738_v3 = vld [vmem:[%s1040_s1 + $0xc] ss:$56 sps:$4 sm:$0xff]   ;;  %v742_v5 = vld [vmem:[%s1040_s1 + $0x8] ss:$56 sps:$4 sm:$0xff]   ;;  %v744_v7 = vld [vmem:[%s1040_s1 + $0x7c] ss:$56 sps:$4 sm:$0xff]  }
   0x3   :  { %357 = vmatpush1.bf16.msra.mxu0 %v737_v2  ;;  %v743_v6 = vld [vmem:[%s1040_s1 + $0x70] ss:$56 sps:$4 sm:$0xff]   ;;  %397 = vmatprep.subr.bf16.mxu1 %v738_v3  ;;  %v746_v8 = vld [vmem:[%s1040_s1 + $0xe4] ss:$56 sps:$4 sm:$0xff]   ;;  %v749_v10 = vld [vmem:[%s1040_s1 + $0xe0] ss:$56 sps:$4 sm:$0xff]  }
   0x4   :  { %358 = vmatprep.subr.bf16.mxu0 %v740_v4  ;;  %398 = vmatpush1.bf16.msra.mxu1 %v742_v5  ;;  %v748_v9 = vld [vmem:[%s1040_s1 + $0x78] ss:$56 sps:$4 sm:$0xff]   ;;  %v750_v11 = vld [vmem:[%s1040_s1 + $0xec] ss:$56 sps:$4 sm:$0xff]   ;;  %v754_v13 = vld [vmem:[%s1040_s1 + $0xe8] ss:$56 sps:$4 sm:$0xff]  }
   0x5   :  { %399 = vmatprep.subr.bf16.mxu1 %v744_v7  ;;  %v752_v12 = vld [vmem:[%s1040_s1 + $0x154] ss:$56 sps:$4 sm:$0xff]   ;;  %v755_v15 = vld [vmem:[%s1040_s1 + $0x150] ss:$56 sps:$4 sm:$0xff]   ;;  %v896_v18 = vld [vmem:[%s1041_s0] sm:$0xf] }
   0x6   :  { %v756_v14 = vld [vmem:[%s1040_s1 + $0x15c] ss:$56 sps:$4 sm:$0xff]   ;;  %v758_v17 = vld [vmem:[%s1040_s1 + $0x158] ss:$56 sps:$4 sm:$0xff]   ;;  %v773_v23 = vld [vmem:[%s1040_s1 + $0x8c] ss:$56 sps:$4 sm:$0xff]  }
   0x7   :  { %359 = vmatpush1.bf16.msra.mxu0 %v743_v6  ;;  %v761_v16 = vld [vmem:[%s1040_s1 + $0x14] ss:$56 sps:$4 sm:$0xff]   ;;  %v759_v20 = vld [vmem:[%s1040_s1 + $0x10] ss:$56 sps:$4 sm:$0xff]   ;;  %v764_v21 = vld [vmem:[%s1040_s1 + $0x84] ss:$56 sps:$4 sm:$0xff]  }
   0x8   :  { %360 = vmatprep.subr.bf16.mxu0 %v746_v8  ;;  %400 = vmatpush1.bf16.msra.mxu1 %v748_v9  ;;  %v767_v19 = vld [vmem:[%s1040_s1 + $0x1c] ss:$56 sps:$4 sm:$0xff]   ;;  %v765_v22 = vld [vmem:[%s1040_s1 + $0x18] ss:$56 sps:$4 sm:$0xff]   ;;  %v771_v26 = vld [vmem:[%s1040_s1 + $0x88] ss:$56 sps:$4 sm:$0xff]  }
   0x9   :  { %401 = vmatprep.subr.bf16.mxu1 %v750_v11  ;;  %v762_v24 = vld [vmem:[%s1040_s1 + $0x80] ss:$56 sps:$4 sm:$0xff]   ;;  %v770_v25 = vld [vmem:[%s1040_s1 + $0xf4] ss:$56 sps:$4 sm:$0xff]   ;;  %v768_v28 = vld [vmem:[%s1040_s1 + $0xf0] ss:$56 sps:$4 sm:$0xff]  }
   0xa   :  { %v779_v27 = vld [vmem:[%s1040_s1 + $0xfc] ss:$56 sps:$4 sm:$0xff]   ;;  %v777_v30 = vld [vmem:[%s1040_s1 + $0xf8] ss:$56 sps:$4 sm:$0xff]   ;;  %v782_v31 = vld [vmem:[%s1040_s1 + $0x16c] ss:$56 sps:$4 sm:$0xff]  }
   0xb   :  { %361 = vmatpush1.bf16.msra.mxu0 %v749_v10  ;;  %v776_v29 = vld [vmem:[%s1040_s1 + $0x164] ss:$56 sps:$4 sm:$0xff]   ;;  %v774_v32 = vld [vmem:[%s1040_s1 + $0x160] ss:$56 sps:$4 sm:$0xff]   ;;  %v788_v37 = vld [vmem:[%s1040_s1 + $0x94] ss:$56 sps:$4 sm:$0xff]  }
   0xc   :  { %362 = vmatprep.subr.bf16.mxu0 %v752_v12  ;;  %402 = vmatpush1.bf16.msra.mxu1 %v754_v13  ;;  %v785_v33 = vld [vmem:[%s1040_s1 + $0x24] ss:$56 sps:$4 sm:$0xff]   ;;  %v780_v34 = vld [vmem:[%s1040_s1 + $0x168] ss:$56 sps:$4 sm:$0xff]   ;;  %v795_v42 = vld [vmem:[%s1040_s1 + $0x98] ss:$56 sps:$4 sm:$0xff]  }
   0xd   :  { %403 = vmatprep.subr.bf16.mxu1 %v756_v14  ;;  %v791_v35 = vld [vmem:[%s1040_s1 + $0x2c] ss:$56 sps:$4 sm:$0xff]   ;;  %v783_v36 = vld [vmem:[%s1040_s1 + $0x20] ss:$56 sps:$4 sm:$0xff]   ;;  %v797_v39 = vld [vmem:[%s1040_s1 + $0x9c] ss:$56 sps:$4 sm:$0xff]  }
   0xe   :  { %v789_v38 = vld [vmem:[%s1040_s1 + $0x28] ss:$56 sps:$4 sm:$0xff]   ;;  %v794_v41 = vld [vmem:[%s1040_s1 + $0x104] ss:$56 sps:$4 sm:$0xff]   ;;  %v800_v45 = vld [vmem:[%s1040_s1 + $0x174] ss:$56 sps:$4 sm:$0xff]  }
   0xf   :  { %363 = vmatpush1.bf16.msra.mxu0 %v755_v15  ;;  %v786_v40 = vld [vmem:[%s1040_s1 + $0x90] ss:$56 sps:$4 sm:$0xff]   ;;  %v803_v43 = vld [vmem:[%s1040_s1 + $0x10c] ss:$56 sps:$4 sm:$0xff]   ;;  %v792_v44 = vld [vmem:[%s1040_s1 + $0x100] ss:$56 sps:$4 sm:$0xff]  }
  0x10   :  { %438 = vmatprep.subr.bf16.mxu0 %v761_v16  ;;  %404 = vmatpush1.bf16.msra.mxu1 %v758_v17  ;;  %v801_v46 = vld [vmem:[%s1040_s1 + $0x108] ss:$56 sps:$4 sm:$0xff]   ;;  %v806_v47 = vld [vmem:[%s1040_s1 + $0x17c] ss:$56 sps:$4 sm:$0xff]   ;;  %v804_v50 = vld [vmem:[%s1040_s1 + $0x178] ss:$56 sps:$4 sm:$0xff]  }
  0x11   :  { %479 = vmatprep.subr.bf16.mxu1 %v767_v19  ;;  %v798_v48 = vld [vmem:[%s1040_s1 + $0x170] ss:$56 sps:$4 sm:$0xff]   ;;  %v809_v49 = vld [vmem:[%s1040_s1 + $0x34] ss:$56 sps:$4 sm:$0xff]   ;;  %v812_v52 = vld [vmem:[%s1040_s1 + $0xa4] ss:$56 sps:$4 sm:$0xff]  }
  0x12   :  { %726 = vmatmul.mubr.msk.bf16.vlgmr.msra.gmra.mrb[0].mxu0 %vm352_vm0, %v896_v18  ;;  %v807_v51 = vld [vmem:[%s1040_s1 + $0x30] ss:$56 sps:$4 sm:$0xff]   ;;  %v810_v53 = vld [vmem:[%s1040_s1 + $0xa0] ss:$56 sps:$4 sm:$0xff]   ;;  %v815_v54 = vld [vmem:[%s1040_s1 + $0x114] ss:$56 sps:$4 sm:$0xff]  }
  0x13   :  { %439 = vmatpush1.bf16.msra.mxu0 %v759_v20  ;;  %470 = vmatprep.mubr.bf16.mxu0 %v819_v1  ;;  %v813_v55 = vld [vmem:[%s1040_s1 + $0x110] ss:$56 sps:$4 sm:$0xff]   ;;  %v818_v56 = vld [vmem:[%s1040_s1 + $0x184] ss:$56 sps:$4 sm:$0xff]   ;;  %v816_v57 = vld [vmem:[%s1040_s1 + $0x180] ss:$56 sps:$4 sm:$0xff]  }
  0x14   :  { %727 = vmatmul.mubr.msk.bf16.vlgmr.msra.gmra.mrb[0].mxu1 %vm352_vm0, %v896_v18  ;;  %440 = vmatprep.subr.bf16.mxu0 %v764_v21 }
  0x15   :  { %480 = vmatpush1.bf16.msra.mxu1 %v765_v22  ;;  %511 = vmatprep.mubr.bf16.mxu1 %v819_v1 }
  0x16   :  { %481 = vmatprep.subr.bf16.mxu1 %v773_v23 }
  0x17   :  { %441 = vmatpush1.bf16.msra.mxu0 %v762_v24 }
  0x18   :  { %442 = vmatprep.subr.bf16.mxu0 %v770_v25 }
  0x19   :  { %482 = vmatpush1.bf16.msra.mxu1 %v771_v26 }
  0x1a   :  { %483 = vmatprep.subr.bf16.mxu1 %v779_v27 }
  0x1b   :  { %443 = vmatpush1.bf16.msra.mxu0 %v768_v28 }
  0x1c   :  { %444 = vmatprep.subr.bf16.mxu0 %v776_v29 }
  0x1d   :  { %484 = vmatpush1.bf16.msra.mxu1 %v777_v30 }
  0x1e   :  { %485 = vmatprep.subr.bf16.mxu1 %v782_v31 }
  0x1f   :  { %445 = vmatpush1.bf16.msra.mxu0 %v774_v32  ;;  %v733_v32 = vld [vmem:[%s1042_s2] ss:$0 sm:$0xff] }
  0x20   :  { %520 = vmatprep.subr.bf16.mxu0 %v785_v33 }
  0x21   :  { %486 = vmatpush1.bf16.msra.mxu1 %v780_v34 }
  0x22   :  { %728 = vmatmul.mubr.msk.bf16.vlgmr.msra.gmra.mrb[4].mxu0 %vm352_vm0, %v896_v18  ;;  %561 = vmatprep.subr.bf16.mxu1 %v791_v35 }
  0x23   :  { %521 = vmatpush1.bf16.msra.mxu0 %v783_v36  ;;  %552 = vmatprep.mubr.bf16.mxu0 %v819_v1 }
  0x24   :  { %729 = vmatmul.mubr.msk.bf16.vlgmr.msra.gmra.mrb[4].mxu1 %vm352_vm0, %v896_v18  ;;  %522 = vmatprep.subr.bf16.mxu0 %v788_v37 }
  0x25   :  { %562 = vmatpush1.bf16.msra.mxu1 %v789_v38  ;;  %593 = vmatprep.mubr.bf16.mxu1 %v819_v1 }
  0x26   :  { %563 = vmatprep.subr.bf16.mxu1 %v797_v39 }
  0x27   :  { %523 = vmatpush1.bf16.msra.mxu0 %v786_v40 }
  0x28   :  { %524 = vmatprep.subr.bf16.mxu0 %v794_v41 }
  0x29   :  { %564 = vmatpush1.bf16.msra.mxu1 %v795_v42 }
  0x2a   :  { %565 = vmatprep.subr.bf16.mxu1 %v803_v43 }
  0x2b   :  { %525 = vmatpush1.bf16.msra.mxu0 %v792_v44 }
  0x2c   :  { %526 = vmatprep.subr.bf16.mxu0 %v800_v45 }
  0x2d   :  { %566 = vmatpush1.bf16.msra.mxu1 %v801_v46 }
  0x2e   :  { %567 = vmatprep.subr.bf16.mxu1 %v806_v47 }
  0x2f   :  { %527 = vmatpush1.bf16.msra.mxu0 %v798_v48 }
  0x30   :  { %602 = vmatprep.subr.bf16.mxu0 %v809_v49 }
  0x31   :  { %568 = vmatpush1.bf16.msra.mxu1 %v804_v50 }
  0x32   :  { %730 = vmatmul.mubr.msk.bf16.vlgmr.msra.gmra.mrb[8].mxu0 %vm352_vm0, %v896_v18 }
  0x33   :  { %603 = vmatpush1.bf16.msra.mxu0 %v807_v51  ;;  %634 = vmatprep.mubr.bf16.mxu0 %v819_v1 }
  0x34   :  { %731 = vmatmul.mubr.msk.bf16.vlgmr.msra.gmra.mrb[8].mxu1 %vm352_vm0, %v896_v18  ;;  %604 = vmatprep.subr.bf16.mxu0 %v812_v52 }
  0x37   :  { %605 = vmatpush1.bf16.msra.mxu0 %v810_v53 }
  0x38   :  { %606 = vmatprep.subr.bf16.mxu0 %v815_v54 }
  0x3b   :  { %607 = vmatpush1.bf16.msra.mxu0 %v813_v55 }
  0x3c   :  { %608 = vmatprep.subr.bf16.mxu0 %v818_v56 }
  0x3f   :  { %609 = vmatpush1.bf16.msra.mxu0 %v816_v57 }
  0x42   :  { %732 = vmatmul.mubr.msk.bf16.vlgmr.msra.gmra.mrb[12].mxu0 %vm352_vm0, %v896_v18 }
  0xe5   :  { %v390_v58 = vpop.f32.mrb[0].mxu0 }
  0xe6   :  { %v392_v59 = vpop.f32.mrb[1].mxu0 }
  0xe7   :  { %v643_v60 = vmax.f32 %v390_v58, %v392_v59  ;;  %v394_v61 = vpop.f32.mrb[2].mxu0  ;;  %v431_v62 = vpop.f32.mrb[0].mxu1 }
  0xe8   :  { %v395_v63 = vpop.f32.mrb[3].mxu0  ;;  %v433_v0 = vpop.f32.mrb[1].mxu1 }
  0xe9   :  { %v644_v1 = vmax.f32 %v643_v60, %v431_v62  ;;  %v435_v2 = vpop.f32.mrb[2].mxu1 }
  0xea   :  { %v436_v3 = vpop.f32.mrb[3].mxu1 }
  0xeb   :  { %v645_v4 = vmax.f32 %v644_v1, %v433_v0 }
  0xf5   :  { %v472_v5 = vpop.f32.mrb[4].mxu0 }
  0xf6   :  { %v646_v6 = vmax.f32 %v645_v4, %v472_v5  ;;  %v474_v7 = vpop.f32.mrb[5].mxu0 }
  0xf7   :  { %v476_v8 = vpop.f32.mrb[6].mxu0  ;;  %v513_v9 = vpop.f32.mrb[4].mxu1 }
  0xf8   :  { %v647_v10 = vmax.f32 %v646_v6, %v474_v7  ;;  %v477_v11 = vpop.f32.mrb[7].mxu0  ;;  %v515_v12 = vpop.f32.mrb[5].mxu1 }
  0xf9   :  { %v517_v13 = vpop.f32.mrb[6].mxu1 }
  0xfa   :  { %v648_v14 = vmax.f32 %v647_v10, %v513_v9  ;;  %v518_v15 = vpop.f32.mrb[7].mxu1 }
  0xfc   :  { %v649_v16 = vmax.f32 %v648_v14, %v515_v12 }
 0x105   :  { %v554_v17 = vpop.f32.mrb[8].mxu0 }
 0x106   :  { %v650_v18 = vmax.f32 %v649_v16, %v554_v17  ;;  %v556_v19 = vpop.f32.mrb[9].mxu0 }
 0x107   :  { %v558_v20 = vpop.f32.mrb[10].mxu0  ;;  %v595_v21 = vpop.f32.mrb[8].mxu1 }
 0x108   :  { %v651_v22 = vmax.f32 %v650_v18, %v556_v19  ;;  %v559_v23 = vpop.f32.mrb[11].mxu0  ;;  %v597_v24 = vpop.f32.mrb[9].mxu1 }
 0x109   :  { %v599_v25 = vpop.f32.mrb[10].mxu1 }
 0x10a   :  { %v652_v26 = vmax.f32 %v651_v22, %v595_v21  ;;  %v600_v27 = vpop.f32.mrb[11].mxu1 }
 0x10c   :  { %v653_v28 = vmax.f32 %v652_v26, %v597_v24 }
 0x115   :  { %v636_v29 = vpop.f32.mrb[12].mxu0 }
 0x116   :  { %v654_v30 = vmax.f32 %v653_v28, %v636_v29  ;;  %v638_v31 = vpop.f32.mrb[13].mxu0 }
 0x117   :  { %v640_v33 = vpop.f32.mrb[14].mxu0 }
 0x118   :  { %v655_v34 = vmax.f32 %v654_v30, %v638_v31  ;;  %v641_v35 = vpop.f32.mrb[15].mxu0 }
 0x11a   :  { %v663_v36 = vadd.f32 %v733_v32, %v655_v34 }
 0x11c   :  { %v664_v37 = vmax.f32 %v663_v36, 0.0 }
 0x11e   :  { %665 = vst [vmem:[%s1043_s3] sm:$0xff] %v664_v37 }

</bundles_post_ra>
